<compile_context>
chip_gen: v7x
topology: tpu7x:2x2x1
jax: 0.10.0
libtpu: 0.0.40
codegen_flags: <defaults>
</compile_context>

<pallas_src>
import functools

import jax
import jax.numpy as jnp
from jax.experimental import pallas as pl
from jax.experimental.pallas import tpu as pltpu


HIDDEN = 32  # fixed by the module: Linear(d_model, 32) -> ReLU -> Linear(32, num_leds)


def _round_up(n, m):
    return pl.cdiv(n, m) * m


def _decoder_kernel(x_ref, w1_ref, b1_ref, w2_ref, b2_ref, noise_ref, out_ref, *, std):
    """One batch tile.

    x_ref:     (tb, d_model)   f32  (batch-major, straight from HBM)
    w1_ref:    (32, d_model)   bf16 (w1^T, resident)
    b1_ref:    (32, 1)         f32
    w2_ref:    (num_leds, 32)  bf16 (w2^T, resident)
    b2_ref:    (num_leds, 1)   f32
    noise_ref: (num_leds, tb)  bf16 (feature-major standard-normal noise)
    out_ref:   (tb, num_leds)  f32/bf16 (batch-major)
    """
    x_bf = x_ref[...].astype(jnp.bfloat16)                       # (tb, d_model)

    # Linear 1 as w1^T @ x^T via a transposed-RHS contraction (MXU-native; no
    # explicit transpose of the big x tile).  Batch ends up on the 128-lane axis,
    # so everything downstream is lane-dense.
    h = jax.lax.dot_general(
        w1_ref[...], x_bf, (((1,), (1,)), ((), ())),
        preferred_element_type=jnp.float32)                      # (32, tb)
    h = jnp.maximum(h + b1_ref[...], 0.0)

    # Linear 2 -> mu.  h / w2 never touch HBM; bf16 inputs just cut vmatmul count.
    mu = jnp.dot(w2_ref[...], h.astype(jnp.bfloat16),
                 preferred_element_type=jnp.float32) + b2_ref[...]   # (num_leds, tb)

    if std != 0.0:  # static Python float (module hyperparameter)
        mu = mu + std * noise_ref[...].astype(jnp.float32)

    y = jnp.tanh(jax.nn.sigmoid(mu))                             # lane-dense epilogue

    # XLU transpose back to batch-major for the store (num_leds < 128 lanes means
    # masked vst, but the vst slot has slack and we avoid an extra HBM output pass).
    out_ref[...] = jnp.transpose(y).astype(out_ref.dtype)


def physical_decoder_forward(x, w1, b1, w2, b2, *, std, key=None, tb=8192,
                             out_dtype=jnp.float32):
    """PhysicalDecoder forward.  x: (B, d_model) -> (B, num_leds).

    w1: (d_model, 32), b1: (32,), w2: (32, num_leds), b2: (num_leds,).
    std: static Python float; key: jax PRNG key for the Gaussian noise.
    """
    B, d_model = x.shape
    hidden = w1.shape[1]
    num_leds = w2.shape[1]
    assert hidden == HIDDEN and w2.shape[0] == HIDDEN and w1.shape[0] == d_model

    # Lane-aligned batch tile: a multiple of 128, no bigger than needed, and (when
    # the batch allows) at least 2 grid steps so v7x's second TensorCore gets work.
    b_ceil = int(_round_up(B, 128))
    tb = max(128, (int(tb) // 128) * 128)
    tb = min(tb, b_ceil)
    if b_ceil >= 256:
        tb = min(tb, max(128, ((b_ceil // 2) // 128) * 128))
    grid = (pl.cdiv(B, tb),)

    # Tiny one-time weight prep (in production: do at init, not per call).
    w1t = w1.T.astype(jnp.bfloat16)                   # (32, d_model)
    b1c = b1.reshape(hidden, 1).astype(jnp.float32)
    w2t = w2.T.astype(jnp.bfloat16)                   # (num_leds, 32)
    b2c = b2.reshape(num_leds, 1).astype(jnp.float32)

    # Standard-normal noise, generated feature-major so the kernel's read is
    # lane-dense; bf16 halves the stream.
    # TODO(synk): replace with in-kernel pltpu.prng_seed/prng_random_bits Box-Muller
    # on real TPU (no interpret/CPU lowering for those primitives).
    if std != 0.0:
        if key is None:
            key = jax.random.PRNGKey(0)
        noise = jax.random.normal(key, (num_leds, B),
                                  dtype=jnp.float32).astype(jnp.bfloat16)
    else:
        noise = jnp.zeros((num_leds, B), jnp.bfloat16)

    kernel = functools.partial(_decoder_kernel, std=float(std))

    return pl.pallas_call(
        kernel,
        out_shape=jax.ShapeDtypeStruct((B, num_leds), out_dtype),
        grid_spec=pltpu.PrefetchScalarGridSpec(
            num_scalar_prefetch=0,
            grid=grid,
            in_specs=[
                pl.BlockSpec((tb, d_model), lambda i: (i, 0)),       # x (ragged OK)
                pl.BlockSpec((hidden, d_model), lambda i: (0, 0)),   # w1^T (resident)
                pl.BlockSpec((hidden, 1), lambda i: (0, 0)),         # b1
                pl.BlockSpec((num_leds, hidden), lambda i: (0, 0)),  # w2^T (resident)
                pl.BlockSpec((num_leds, 1), lambda i: (0, 0)),       # b2
                pl.BlockSpec((num_leds, tb), lambda i: (0, i)),      # noise
            ],
            out_specs=pl.BlockSpec((tb, num_leds), lambda i: (i, 0)),
        ),
        compiler_params=pltpu.CompilerParams(
            dimension_semantics=("parallel",),  # shards steps across v7x's two TCs
        ),
    )(x, w1t, b1c, w2t, b2c, noise)


def _reference(x, w1, b1, w2, b2):
    """Noise-free f32 reference, mimicking the kernel's bf16 matmul inputs."""
    xb = x.astype(jnp.bfloat16).astype(jnp.float32)
    w1b = w1.astype(jnp.bfloat16).astype(jnp.float32)
    w2b = w2.astype(jnp.bfloat16).astype(jnp.float32)
    h = jnp.maximum(
        jnp.dot(xb, w1b, precision=jax.lax.Precision.HIGHEST) + b1[None, :], 0.0)
    hb = h.astype(jnp.bfloat16).astype(jnp.float32)
    mu = jnp.dot(hb, w2b, precision=jax.lax.Precision.HIGHEST) + b2[None, :]
    return jnp.tanh(jax.nn.sigmoid(mu))


if __name__ == "__main__":
    # Module hyperparameters (small, consistent with the forward pass).
    num_leds = 16
    d_model = 32
    std = 0.1
    batch = 200  # not a multiple of 128 -> exercises the ragged last tile (2 steps)

    key = jax.random.PRNGKey(0)
    k_x, k_w1, k_b1, k_w2, k_b2, k_noise = jax.random.split(key, 6)

    x = jax.random.normal(k_x, (batch, d_model), dtype=jnp.float32)
    w1 = jax.random.normal(k_w1, (d_model, HIDDEN), dtype=jnp.float32) * 0.1
    b1 = jax.random.normal(k_b1, (HIDDEN,), dtype=jnp.float32) * 0.1
    w2 = jax.random.normal(k_w2, (HIDDEN, num_leds), dtype=jnp.float32) * 0.1
    b2 = jax.random.normal(k_b2, (num_leds,), dtype=jnp.float32) * 0.1

    # (1) Deterministic path (std=0) must match the reference.
    out0 = jax.block_until_ready(
        physical_decoder_forward(x, w1, b1, w2, b2, std=0.0))
    ref0 = _reference(x, w1, b1, w2, b2)
    assert out0.shape == (batch, num_leds)
    assert float(jnp.max(jnp.abs(out0 - ref0))) < 2e-3, "kernel mismatch vs reference"

    # (2) Stochastic path: mu + std * N(0,1), then sigmoid, then tanh.
    out1 = jax.block_until_ready(
        physical_decoder_forward(x, w1, b1, w2, b2, std=std, key=k_noise))
    assert out1.shape == (batch, num_leds)
    assert bool(jnp.all(jnp.isfinite(out1)))
    # tanh(sigmoid(.)) lies strictly inside (0, tanh(1) ~= 0.761594)
    assert bool(jnp.all((out1 > 0.0) & (out1 < 0.7616)))
    assert float(jnp.max(jnp.abs(out1 - out0))) > 1e-4, "noise was not applied"

    # (3) bf16 output variant (halves the output HBM stream).
    out_bf = jax.block_until_ready(
        physical_decoder_forward(x, w1, b1, w2, b2, std=0.0,
                                 out_dtype=jnp.bfloat16))
    assert out_bf.dtype == jnp.bfloat16
    assert float(jnp.max(jnp.abs(out_bf.astype(jnp.float32) - ref0))) < 1e-2

    print("KERNEL_OK")
</pallas_src>

<mosaic_0001>
module attributes {stable_mosaic.version = 11 : i64} {
  func.func @_decoder_kernel(%arg0: i32, %arg1: memref<128x32xf32, #tpu.memory_space<vmem>>, %arg2: memref<32x32xbf16, #tpu.memory_space<vmem>>, %arg3: memref<32x1xf32, #tpu.memory_space<vmem>>, %arg4: memref<16x32xbf16, #tpu.memory_space<vmem>>, %arg5: memref<16x1xf32, #tpu.memory_space<vmem>>, %arg6: memref<16x128xbf16, #tpu.memory_space<vmem>>, %arg7: memref<128x16xf32, #tpu.memory_space<vmem>>) attributes {dimension_semantics = [#tpu.dimension_semantics<parallel>], iteration_bounds = array<i64: 2>, scalar_prefetch = 0 : i64, scratch_operands = 0 : i64, tpu.core_type = #tpu.core_type<tc>, window_params = [{transform_indices = @transform_0, window_bounds = array<i64: 128, 32>}, {pipeline_mode = #tpu.pipeline_mode<synchronous>, transform_indices = @transform_1, window_bounds = array<i64: 32, 32>}, {pipeline_mode = #tpu.pipeline_mode<synchronous>, transform_indices = @transform_2, window_bounds = array<i64: 32, 1>}, {pipeline_mode = #tpu.pipeline_mode<synchronous>, transform_indices = @transform_3, window_bounds = array<i64: 16, 32>}, {pipeline_mode = #tpu.pipeline_mode<synchronous>, transform_indices = @transform_4, window_bounds = array<i64: 16, 1>}, {transform_indices = @transform_5, window_bounds = array<i64: 16, 128>}, {transform_indices = @transform_6, window_bounds = array<i64: 128, 16>}]} {
    %c0 = arith.constant 0 : index
    %c0_0 = arith.constant 0 : index
    %0 = vector.load %arg1[%c0, %c0_0] : memref<128x32xf32, #tpu.memory_space<vmem>>, vector<128x32xf32>
    %1 = arith.truncf %0 : vector<128x32xf32> to vector<128x32xbf16>
    %c0_1 = arith.constant 0 : index
    %c0_2 = arith.constant 0 : index
    %2 = vector.load %arg2[%c0_1, %c0_2] : memref<32x32xbf16, #tpu.memory_space<vmem>>, vector<32x32xbf16>
    %cst = arith.constant dense<0.000000e+00> : vector<32x128xf32>
    %3 = tpu.matmul %2, %1, %cst {dimension_numbers = #tpu.dot_dimension_numbers<[1], [1], [0], [0], [0, 0, 1, 0], [], []>} : vector<32x32xbf16>, vector<128x32xbf16>, vector<32x128xf32> -> vector<32x128xf32>
    %c0_3 = arith.constant 0 : index
    %c0_4 = arith.constant 0 : index
    %4 = vector.load %arg3[%c0_3, %c0_4] : memref<32x1xf32, #tpu.memory_space<vmem>>, vector<32x1xf32>
    %5 = vector.broadcast %4 : vector<32x1xf32> to vector<32x128xf32>
    %6 = arith.addf %3, %5 : vector<32x128xf32>
    %cst_5 = arith.constant 0.000000e+00 : f32
    %7 = vector.broadcast %cst_5 : f32 to vector<32x128xf32>
    %8 = arith.maximumf %6, %7 : vector<32x128xf32>
    %c0_6 = arith.constant 0 : index
    %c0_7 = arith.constant 0 : index
    %9 = vector.load %arg4[%c0_6, %c0_7] : memref<16x32xbf16, #tpu.memory_space<vmem>>, vector<16x32xbf16>
    %10 = arith.truncf %8 : vector<32x128xf32> to vector<32x128xbf16>
    %cst_8 = arith.constant dense<0.000000e+00> : vector<16x128xf32>
    %11 = tpu.matmul %9, %10, %cst_8 {dimension_numbers = #tpu.dot_dimension_numbers<[1], [0], [0], [1], [0, 0, 1, 1], [], []>} : vector<16x32xbf16>, vector<32x128xbf16>, vector<16x128xf32> -> vector<16x128xf32>
    %c0_9 = arith.constant 0 : index
    %c0_10 = arith.constant 0 : index
    %12 = vector.load %arg5[%c0_9, %c0_10] : memref<16x1xf32, #tpu.memory_space<vmem>>, vector<16x1xf32>
    %13 = vector.broadcast %12 : vector<16x1xf32> to vector<16x128xf32>
    %14 = arith.addf %11, %13 : vector<16x128xf32>
    %15 = arith.negf %14 : vector<16x128xf32>
    %16 = math.exp %15 : vector<16x128xf32>
    %cst_11 = arith.constant 1.000000e+00 : f32
    %17 = vector.broadcast %cst_11 : f32 to vector<16x128xf32>
    %18 = arith.addf %17, %16 : vector<16x128xf32>
    %19 = arith.divf %17, %18 : vector<16x128xf32>
    %20 = math.tanh %19 : vector<16x128xf32>
    %21 = tpu.transpose %20, [1, 0] : vector<16x128xf32> -> vector<128x16xf32>
    %c0_12 = arith.constant 0 : index
    %c0_13 = arith.constant 0 : index
    %22 = vector.load %arg7[%c0_12, %c0_13] : memref<128x16xf32, #tpu.memory_space<vmem>>, vector<128x16xf32>
    tpu.vector_store %arg7[%c0_12, %c0_13], %21 {strides = array<i32>} : memref<128x16xf32, #tpu.memory_space<vmem>>, vector<128x16xf32>,
    return
  }
  func.func @transform_0(%arg0: i32) -> (i32, i32) {
    %c0_i32 = arith.constant 0 : i32
    %c0_i32_0 = arith.constant 0 : i32
    return %arg0, %c0_i32 : i32, i32
  }
  func.func @transform_1(%arg0: i32) -> (i32, i32) {
    %c0_i32 = arith.constant 0 : i32
    %c0_i32_0 = arith.constant 0 : i32
    %c0_i32_1 = arith.constant 0 : i32
    return %c0_i32, %c0_i32_0 : i32, i32
  }
  func.func @transform_2(%arg0: i32) -> (i32, i32) {
    %c0_i32 = arith.constant 0 : i32
    %c0_i32_0 = arith.constant 0 : i32
    %c0_i32_1 = arith.constant 0 : i32
    return %c0_i32, %c0_i32_0 : i32, i32
  }
  func.func @transform_3(%arg0: i32) -> (i32, i32) {
    %c0_i32 = arith.constant 0 : i32
    %c0_i32_0 = arith.constant 0 : i32
    %c0_i32_1 = arith.constant 0 : i32
    return %c0_i32, %c0_i32_0 : i32, i32
  }
  func.func @transform_4(%arg0: i32) -> (i32, i32) {
    %c0_i32 = arith.constant 0 : i32
    %c0_i32_0 = arith.constant 0 : i32
    %c0_i32_1 = arith.constant 0 : i32
    return %c0_i32, %c0_i32_0 : i32, i32
  }
  func.func @transform_5(%arg0: i32) -> (i32, i32) {
    %c0_i32 = arith.constant 0 : i32
    %c0_i32_0 = arith.constant 0 : i32
    return %c0_i32, %arg0 : i32, i32
  }
  func.func @transform_6(%arg0: i32) -> (i32, i32) {
    %c0_i32 = arith.constant 0 : i32
    %c0_i32_0 = arith.constant 0 : i32
    return %arg0, %c0_i32 : i32, i32
  }
}

</mosaic_0001>

<bundles_post_ra>
// kernel: tpu_custom_call.1
= control target key start
LH: loop header
LB: loop body
LE: loop exit
PB: predicated region body
PF: predicated region fallthrough
CT: control target
= control target key end

     0   :  { %s1226_s21 = smov 0   ;;  %s1228_s22 = smov 0   ;;  %s1462_s0 = inlined_call_operand.vmem [shape: f32[200,32], index: 0, kind: input, shape index: {}]   ;;  %s1463_s1 = inlined_call_operand.vmem [shape: bf16[32,32], index: 1, kind: input, shape index: {}]   ;;  %s1464_s2 = inlined_call_operand.vmem [shape: f32[32,1], index: 2, kind: input, shape index: {}]   ;;  %s1465_s3 = inlined_call_operand.vmem [shape: bf16[16,32], index: 3, kind: input, shape index: {}]   ;;  %s1466_s4 = inlined_call_operand.vmem [shape: f32[16,1], index: 4, kind: input, shape index: {}]   ;;  %s1467_s5 = inlined_call_operand.vmem [shape: bf16[16,200], index: 5, kind: input, shape index: {}]   ;;  %s1468_s6 = inlined_call_operand.vmem [shape: f32[200,16], index: 6, kind: output, shape index: {}]  }
   0x1   :  { %s1230_s23 = smov 0  }
   0x2 LB: > { %s1239_s5 = sadd.s32 4294967295, %s1154_s23   ;;  %s1241_s24 = sadd.s32 1, %s1154_s23   ;;  %s1154_s23 = sphi %s1230_s23, %s1475_s23   ;;  %s1150_s22 = sphi %s1228_s22, %s1474_s22   ;;  %s1146_s21 = sphi %s1226_s21, %s1473_s21  }
   0x3   : > { %s130_s25 = ssub.s32 %s1154_s23, %s1241_s24  ;;  %s133_s26 = sadd.s32 1, %s1150_s22 }
   0x4   : > { %p131_p0 = scmp.eq.s32.totalorder %s130_s25, 0  ;;  %p140_p1 = scmp.ne.s32.totalorder %s1150_s22, %s1146_s21 }
   0x5   : > { %p170_p2 = scmp.eq.s32.totalorder %s1239_s5, 1  ;;  %p908_p4 = scmp.ge.s32.totalorder %s1154_s23, 2 }
   0x6   : > { %s1249_s27 = scalar_select %p131_p0, %s1150_s22, %s133_s26  }
   0x7   : > { %p1251_p3 = por %p170_p2, %p140_p1  ;;  %p911_p5 = scmp.ge.s32.totalorder %s1154_s23, 1 }
   0x8   : > { %p275_p6 = scmp.lt.s32.totalorder %s1154_s23, 3 }
   0xa   : > { %p276_p7 = pnand %p911_p5, %p275_p6 }
   0xb   : > { %s1256_s29 = sshll.u32 (!%p276_p7), %s1239_s5, 4  ;;  %v1085_v0 = vld [vmem:[%s1463_s1] sm:$0xff] (!%p276_p7)   ;;  %vm401_vm0 = vcmask (!%p276_p7), 261120   ;;  %v369_v2 = vld [vmem:[%s1464_s2 + $0x10] sm:$0xff] (!%p276_p7)  ;;  %v1188_v3 = vmov (!%p276_p7), 0   ;;  %v368_v4 = vld [vmem:[%s1464_s2 + $0x8] sm:$0xff] (!%p276_p7) }
   0xc   : > { %279 = sbr.rel (%p276_p7) target bundleno = 808 (0x328), region = 81  ;;  %p324_p8 = scmp.lt.s32.totalorder (!%p276_p7), %s1256_s29, 24  ;;  %v367_v1 = vld [vmem:[%s1464_s2] sm:$0xff] (!%p276_p7)  ;;  %972 = vmatprep.mubr.msk.bf16.mxu0 (!%p276_p7), %vm401_vm0, %v1085_v0  ;;  %1083 = vset.pattern.permute.xlu0 (!%p276_p7), %v1188_v3  ;;  %v370_v5 = vld [vmem:[%s1464_s2 + $0x18] sm:$0xff] (!%p276_p7)  ;;  %v490_v14 = vld [vmem:[%s1466_s4 + $0x8] sm:$0xff] (!%p276_p7)  ;;  %v1189_v41 = vmov (!%p276_p7), 0.0  }
   0xd   : > { %373 = vperm.xlu0 (!%p276_p7), %1083, %v367_v1   ;;  %1084 = vset.pattern.permute.xlu1 (!%p276_p7), %v1188_v3  ;;  %v489_v12 = vld [vmem:[%s1466_s4] sm:$0xff] (!%p276_p7)  ;;  %v1086_v40 = vld [vmem:[%s1463_s1 + $0x8] sm:$0xff] (!%p276_p7)   ;;  %vm1190_vm1 = vmmov (!%p276_p7), 0   ;;  %s316_s11 = sand.u32 (!%p276_p7), 1, %s1146_s21   ;;  %vm596_vm2 = vcmask (!%p276_p7), 130048  }
   0xe   : > { %383 = vperm.xlu1 (!%p276_p7), %1084, %v369_v2   ;;  %976 = vmatprep.subr.bf16.mxu1 (!%p276_p7), %v1189_v41  ;;  %v1087_v60 = vld [vmem:[%s1465_s3] sm:$0xff] (!%p276_p7)  }
   0xf   : > { %980 = vmatprep.mubr.msk.bf16.mxu1 (!%p276_p7), %vm1190_vm1, %v1189_v41 }
  0x11   : > { %378 = vperm.xlu0 (!%p276_p7), %1083, %v368_v4  }
  0x12   : > { %388 = vperm.xlu1 (!%p276_p7), %1084, %v370_v5  }
  0x13   : > { %s325_s12 = scalar_select %p324_p8, %s1256_s29, 24 }
  0x14   : > { %s621_s21 = ssub.s32 (%p1251_p3), 25, %s1256_s29  ;;  %s940_s14 = sshll.u32 (%p1251_p3), %s1239_s5, 7 }
  0x15   : > { %s914_s13 = sshll.u32 %s325_s12, 3  ;;  %493 = vperm.xlu0 %1083, %v489_v12   ;;  %s912_s12 = sshll.u32 %s316_s11, 7 }
  0x16   : > { %s1276_s18 = scalar_lea.vmem %s1462_s0, %s914_s13  ;;  %498 = vperm.xlu1 %1084, %v490_v14   ;;  %s1328_s13 = scalar_lea.vmem [#allocation3], %s912_s12  }
  0x17   : > { %v339_v6 = vld [vmem:[%s1276_s18] sm:$0xff]  ;;  %v340_v7 = vld [vmem:[%s1276_s18 + $0x8] sm:$0xff]  ;;  %v341_v8 = vld [vmem:[%s1276_s18 + $0x10] sm:$0xff]  ;;  %p622_p9 = scmp.lt.s32.totalorder (%p1251_p3), %s621_s21, 16  ;;  %s1369_s17 = scalar_lea.vmem (%p1251_p3), %s1468_s6, %s940_s14  }
  0x18   : > { %v355_v9 = vpack.c.bf16 %v340_v7, %v339_v6  ;;  %v342_v10 = vld [vmem:[%s1276_s18 + $0x18] sm:$0xff]  ;;  %v343_v15 = vld [vmem:[%s1276_s18 + $0x20] sm:$0xff]  ;;  %v344_v16 = vld [vmem:[%s1276_s18 + $0x28] sm:$0xff] }
  0x19   : > { %v356_v11 = vpack.c.bf16 %v342_v10, %v341_v8  ;;  %v357_v18 = vpack.c.bf16 %v344_v16, %v343_v15  ;;  %v345_v19 = vld [vmem:[%s1276_s18 + $0x30] sm:$0xff]  ;;  %v346_v20 = vld [vmem:[%s1276_s18 + $0x38] sm:$0xff]  ;;  %v347_v23 = vld [vmem:[%s1276_s18 + $0x40] sm:$0xff] }
  0x1a   : > { %984 = vmatprep.subr.msk.bf16.mxu0 %vm401_vm0, %v355_v9  ;;  %v409_v13 = vsel %vm401_vm0, %v355_v9, 0  ;;  %v358_v22 = vpack.c.bf16 %v346_v20, %v345_v19  ;;  %v348_v24 = vld [vmem:[%s1276_s18 + $0x48] sm:$0xff]  ;;  %v349_v27 = vld [vmem:[%s1276_s18 + $0x50] sm:$0xff]  ;;  %v350_v28 = vld [vmem:[%s1276_s18 + $0x58] sm:$0xff] }
  0x1b   : > { %957 = vmatpush3.bf16.xpose.msra.mxu0 %v409_v13  ;;  %v412_v17 = vsel %vm401_vm0, %v356_v11, 0  ;;  %v415_v21 = vsel %vm401_vm0, %v357_v18, 0  ;;  %v359_v26 = vpack.c.bf16 %v348_v24, %v347_v23  ;;  %v360_v30 = vpack.c.bf16 %v350_v28, %v349_v27  ;;  %v351_v31 = vld [vmem:[%s1276_s18 + $0x60] sm:$0xff]  ;;  %v352_v32 = vld [vmem:[%s1276_s18 + $0x68] sm:$0xff]  ;;  %v353_v35 = vld [vmem:[%s1276_s18 + $0x70] sm:$0xff] }
  0x1c   : > { %985 = vmatprep.subr.msk.bf16.mxu0 %vm401_vm0, %v356_v11  ;;  %v418_v25 = vsel %vm401_vm0, %v358_v22, 0  ;;  %v361_v34 = vpack.c.bf16 %v352_v32, %v351_v31  ;;  %v354_v36 = vld [vmem:[%s1276_s18 + $0x78] sm:$0xff] }
  0x1d   : > { %v421_v29 = vsel %vm401_vm0, %v359_v26, 0  ;;  %v424_v33 = vsel %vm401_vm0, %v360_v30, 0  ;;  %v362_v38 = vpack.c.bf16 %v354_v36, %v353_v35 }
  0x1e   : > { %v427_v37 = vsel %vm401_vm0, %v361_v34, 0 }
  0x1f   : > { %v430_v39 = vsel %vm401_vm0, %v362_v38, 0 }
  0x23   : > { %959 = vmatpush3.bf16.xpose.msra.mxu0 %v412_v17 }
  0x24   : > { %986 = vmatprep.subr.msk.bf16.mxu0 %vm401_vm0, %v357_v18 }
  0x2b   : > { %961 = vmatpush3.bf16.xpose.msra.mxu0 %v415_v21 }
  0x2c   : > { %987 = vmatprep.subr.msk.bf16.mxu0 %vm401_vm0, %v358_v22 }
  0x33   : > { %963 = vmatpush3.bf16.xpose.msra.mxu0 %v418_v25 }
  0x34   : > { %988 = vmatprep.subr.msk.bf16.mxu0 %vm401_vm0, %v359_v26 }
  0x3b   : > { %965 = vmatpush3.bf16.xpose.msra.mxu0 %v421_v29 }
  0x3c   : > { %989 = vmatprep.subr.msk.bf16.mxu0 %vm401_vm0, %v360_v30 }
  0x43   : > { %967 = vmatpush3.bf16.xpose.msra.mxu0 %v424_v33 }
  0x44   : > { %990 = vmatprep.subr.msk.bf16.mxu0 %vm401_vm0, %v361_v34 }
  0x4b   : > { %969 = vmatpush3.bf16.xpose.msra.mxu0 %v427_v37 }
  0x4c   : > { %991 = vmatprep.subr.msk.bf16.mxu0 %vm401_vm0, %v362_v38 }
  0x53   : > { %971 = vmatpush3.bf16.xpose.msra.mxu0 %v430_v39 }
  0x5a   : > { %973 = vmatmul.mubr.msk.bf16.vlgmr.msra.gmra.mrb[0].mxu0 %vm401_vm0, %v1086_v40 }
  0x8c   : > { %v374_v43 = vpop.permute.xlu0 %373 }
  0x8d   : > { %v384_v42 = vpop.permute.xlu1 %383 }
  0x90   : > { %v379_v50 = vpop.permute.xlu0 %378 }
  0x91   : > { %v389_v47 = vpop.permute.xlu1 %388 }
  0x94   : > { %v494_v61 = vpop.permute.xlu0 %493 }
  0x95   : > { %v499_v1 = vpop.permute.xlu1 %498 }
 0x12d   : > { %v974_v44 = vpop.f32.mrb[0].mxu0 }
 0x12e   : > { %v475_v45 = vadd.f32 %v974_v44, %v384_v42  ;;  %v466_v46 = vpop.f32.mrb[1].mxu0 }
 0x12f   : > { %v467_v48 = vadd.f32 %v466_v46, %v374_v43  ;;  %v975_v49 = vpop.f32.mrb[2].mxu0 }
 0x130   : > { %v478_v51 = vadd.f32 %v975_v49, %v389_v47  ;;  %v469_v52 = vpop.f32.mrb[3].mxu0  ;;  %v483_v54 = vmax.f32 %v475_v45, 0.0 }
 0x131   : > { %v470_v53 = vadd.f32 %v469_v52, %v379_v50  ;;  %v481_v56 = vmax.f32 %v467_v48, 0.0 }
 0x132   : > { %v484_v55 = vmax.f32 %v478_v51, 0.0 }
 0x133   : > { %v482_v57 = vmax.f32 %v470_v53, 0.0 }
 0x134   : > { %v488_v58 = vpack.c.bf16 %v484_v55, %v483_v54 }
 0x135   : > { %v487_v59 = vpack.c.bf16 %v482_v57, %v481_v56 }
 0x137   : > { %977 = vmatpush3.bf16.msra.mxu1 %v487_v59 }
 0x138   : > { %978 = vmatprep.subr.bf16.mxu1 %v1189_v41 }
 0x13b   : > { %979 = vmatpush3.bf16.msra.mxu1 %v488_v58 }
 0x13e   : > { %981 = vmatmul.mubr.msk.bf16.vlgmr.msra.gmra.mrb[0].mxu1 %vm401_vm0, %v1087_v60 }
 0x211   : > { %v543_v62 = vpop.f32.mrb[0].mxu1 }
 0x212   : > { %v544_v63 = vadd.f32 %v543_v62, %v494_v61  ;;  %v982_v0 = vpop.f32.mrb[1].mxu1 }
 0x213   : > { %v546_v2 = vpop.f32.mrb[2].mxu1 }
 0x214   : > { %v921_v3 = vmul.f32 -1.442695, %v544_v63  ;;  %v547_v4 = vadd.f32 %v546_v2, %v499_v1  ;;  %v983_v5 = vpop.f32.mrb[3].mxu1 }
 0x216   : > { %1088 = vpow2.f32 %v921_v3  ;;  %v922_v6 = vmul.f32 -1.442695, %v547_v4 }
 0x218   : > { %1090 = vpow2.f32 %v922_v6 }
 0x220   : > { %v1089_v7 = vpop.eup %1088 }
 0x221   : > { %v556_v8 = vadd.f32 1.0, %v1089_v7 }
 0x222   : > { %v1091_v9 = vpop.eup %1090 }
 0x223   : > { %1092 = vrcp.f32 %v556_v8  ;;  %v557_v10 = vadd.f32 1.0, %v1091_v9 }
 0x225   : > { %1094 = vrcp.f32 %v557_v10 }
 0x22d   : > { %v1093_v11 = vpop.eup %1092 }
 0x22e   : > { %1096 = vtanh.f32 %v1093_v11 }
 0x22f   : > { %v1095_v12 = vpop.eup %1094 }
 0x230   : > { %1098 = vtanh.f32 %v1095_v12 }
 0x238   : > { %v1097_v13 = vpop.eup %1096 }
 0x239   : > { %564 = vxpose.xlu0.b32.start [1/2] (short) %v1097_v13, 128 }
 0x23a   : > { %v1099_v14 = vpop.eup %1098 }
 0x23d   : > { %565 = vxpose.xlu0.b32.end [2/2] (short) %v1099_v14, 128 }
 0x2b9   : > { %v580_v15 = vpop.trf.xlu0 }
 0x2ba   : > { %597 = vst.msk [vmem:[%s1328_s13] sm:$0xff] %vm596_vm2, %v580_v15 }
 0x2bd   : > { %v581_v16 = vpop.trf.xlu0 }
 0x2be   : > { %598 = vst.msk [vmem:[%s1328_s13 + $0x8] sm:$0xff] %vm596_vm2, %v581_v16 }
 0x2c1   : > { %v582_v17 = vpop.trf.xlu0 }
 0x2c2   : > { %599 = vst.msk [vmem:[%s1328_s13 + $0x10] sm:$0xff] %vm596_vm2, %v582_v17 }
 0x2c5   : > { %v583_v18 = vpop.trf.xlu0 }
 0x2c6   : > { %600 = vst.msk [vmem:[%s1328_s13 + $0x18] sm:$0xff] %vm596_vm2, %v583_v18 }
 0x2c9   : > { %v584_v19 = vpop.trf.xlu0 }
 0x2ca   : > { %601 = vst.msk [vmem:[%s1328_s13 + $0x20] sm:$0xff] %vm596_vm2, %v584_v19 }
 0x2cd   : > { %v585_v20 = vpop.trf.xlu0 }
 0x2ce   : > { %602 = vst.msk [vmem:[%s1328_s13 + $0x28] sm:$0xff] %vm596_vm2, %v585_v20 }
 0x2d1   : > { %v586_v21 = vpop.trf.xlu0 }
 0x2d2   : > { %603 = vst.msk [vmem:[%s1328_s13 + $0x30] sm:$0xff] %vm596_vm2, %v586_v21 }
 0x2d5   : > { %v587_v22 = vpop.trf.xlu0 }
 0x2d6   : > { %604 = vst.msk [vmem:[%s1328_s13 + $0x38] sm:$0xff] %vm596_vm2, %v587_v22 }
 0x2d9   : > { %v588_v23 = vpop.trf.xlu0 }
 0x2da   : > { %605 = vst.msk [vmem:[%s1328_s13 + $0x40] sm:$0xff] %vm596_vm2, %v588_v23 }
 0x2dd   : > { %v589_v24 = vpop.trf.xlu0 }
 0x2de   : > { %606 = vst.msk [vmem:[%s1328_s13 + $0x48] sm:$0xff] %vm596_vm2, %v589_v24 }
 0x2e1   : > { %v590_v25 = vpop.trf.xlu0 }
 0x2e2   : > { %607 = vst.msk [vmem:[%s1328_s13 + $0x50] sm:$0xff] %vm596_vm2, %v590_v25 }
 0x2e5   : > { %v591_v26 = vpop.trf.xlu0 }
 0x2e6   : > { %608 = vst.msk [vmem:[%s1328_s13 + $0x58] sm:$0xff] %vm596_vm2, %v591_v26 }
 0x2e9   : > { %v592_v27 = vpop.trf.xlu0 }
 0x2ea   : > { %609 = vst.msk [vmem:[%s1328_s13 + $0x60] sm:$0xff] %vm596_vm2, %v592_v27 }
 0x2ed   : > { %v593_v28 = vpop.trf.xlu0 }
 0x2ee   : > { %610 = vst.msk [vmem:[%s1328_s13 + $0x68] sm:$0xff] %vm596_vm2, %v593_v28 }
 0x2f0   : > { %619 = sbr.rel (!%p1251_p3) target bundleno = 808 (0x328), region = 89 }
 0x2f1   : > { %v594_v29 = vpop.trf.xlu0 }
 0x2f2   : > { %611 = vst.msk [vmem:[%s1328_s13 + $0x70] sm:$0xff] %vm596_vm2, %v594_v29 }
 0x2f5   : > { %v595_v30 = vpop.trf.xlu0 }
 0x2f6   : > { %612 = vst.msk [vmem:[%s1328_s13 + $0x78] sm:$0xff] %vm596_vm2, %v595_v30 }
 0x2f7   : > { %s1477_s21 = smov (!%p622_p9, %s621_s21), 16 }
 0x2f8   : > { %s925_s18 = sshll.u32 %s1477_s21, 7 }
 0x2f9   : > { %p928_p10 = scmp.eq.s32.totalorder %s925_s18, 0 }
 0x2fa   : > { %s1375_s19 = sshrl.u32 (!%p928_p10), %s1477_s21, 4 }
 0x2fb   : > { %630 = sbr.rel (%p928_p10) target bundleno = 808 (0x328), region = 93  ;;  %p929_p11 = scmp.le.s32.totalorder (!%p928_p10), %s1375_s19, 0 }
 0x302   : > { %856 = sbr.rel (%p929_p11) target bundleno = 787 (0x313), region = 177  ;;  %s1470_s5 = smov (!%p929_p11), %s1369_s17 }
 0x303   : > { %s1471_s28 = smov (!%p929_p11), %s1328_s13  ;;  %s1384_s29 = smov (!%p929_p11), 0  }
 0x304   : > { %s1386_s20 = smov (!%p929_p11), 0  }
 0x309 LB: >> { %v722_v31 = vld [vmem:[%s1162_s28] sm:$0xff]  ;;  %v724_v32 = vld [vmem:[%s1162_s28 + $0x8] sm:$0xff]  ;;  %v726_v33 = vld [vmem:[%s1162_s28 + $0x10] sm:$0xff]  ;;  %s754_s23 = sadd.s32 1, %s1166_s29  ;;  %s716_s20 = sadd.s32 1, %s1170_s20   ;;  %s1170_s20 = sphi %s1386_s20, %s716_s20   ;;  %s1166_s29 = sphi %s1384_s29, %s1472_s29   ;;  %s1162_s28 = sphi %s1471_s28, %s759_s28   ;;  %s1158_s5 = sphi %s1470_s5, %s760_s5  }
 0x30a   : >> { %723 = vst [vmem:[%s1158_s5] sm:$0xff] %v722_v31  ;;  %725 = vst [vmem:[%s1158_s5 + $0x8] sm:$0xff] %v724_v32  ;;  %v728_v34 = vld [vmem:[%s1162_s28 + $0x18] sm:$0xff]  ;;  %v730_v35 = vld [vmem:[%s1162_s28 + $0x20] sm:$0xff]  ;;  %p755_p12 = scmp.ge.s32.totalorder %s754_s23, %s1375_s19  ;;  %p715_p13 = scmp.ge.s32.totalorder %s716_s20, %s1375_s19 }
 0x30b   : >> { %727 = vst [vmem:[%s1158_s5 + $0x10] sm:$0xff] %v726_v33  ;;  %v732_v36 = vld [vmem:[%s1162_s28 + $0x28] sm:$0xff]  ;;  %729 = vst [vmem:[%s1158_s5 + $0x18] sm:$0xff] %v728_v34  ;;  %v734_v37 = vld [vmem:[%s1162_s28 + $0x30] sm:$0xff] }
 0x30c   : >> { %731 = vst [vmem:[%s1158_s5 + $0x20] sm:$0xff] %v730_v35  ;;  %733 = vst [vmem:[%s1158_s5 + $0x28] sm:$0xff] %v732_v36  ;;  %v736_v38 = vld [vmem:[%s1162_s28 + $0x38] sm:$0xff]  ;;  %v738_v39 = vld [vmem:[%s1162_s28 + $0x40] sm:$0xff]  ;;  %s1479_s23 = smov (%p755_p12, %s754_s23), 0  ;;  %718 = sbr.rel (!%p715_p13) target bundleno = 777 (0x309), region = 183 }
 0x30d   : >> { %735 = vst [vmem:[%s1158_s5 + $0x30] sm:$0xff] %v734_v37  ;;  %737 = vst [vmem:[%s1158_s5 + $0x38] sm:$0xff] %v736_v38  ;;  %v740_v40 = vld [vmem:[%s1162_s28 + $0x48] sm:$0xff]  ;;  %v742_v41 = vld [vmem:[%s1162_s28 + $0x50] sm:$0xff]  ;;  %s930_s25 = sshll.u32 %s1479_s23, 7  ;;  %s1472_s29 = smov %s1479_s23 }
 0x30e   : >> { %739 = vst [vmem:[%s1158_s5 + $0x40] sm:$0xff] %v738_v39  ;;  %v744_v42 = vld [vmem:[%s1162_s28 + $0x58] sm:$0xff]  ;;  %741 = vst [vmem:[%s1158_s5 + $0x48] sm:$0xff] %v740_v40  ;;  %v746_v43 = vld [vmem:[%s1162_s28 + $0x60] sm:$0xff] }
 0x30f   : >> { %743 = vst [vmem:[%s1158_s5 + $0x50] sm:$0xff] %v742_v41  ;;  %745 = vst [vmem:[%s1158_s5 + $0x58] sm:$0xff] %v744_v42  ;;  %v748_v44 = vld [vmem:[%s1162_s28 + $0x68] sm:$0xff]  ;;  %v750_v45 = vld [vmem:[%s1162_s28 + $0x70] sm:$0xff] }
 0x310   : >> { %747 = vst [vmem:[%s1158_s5 + $0x60] sm:$0xff] %v746_v43  ;;  %749 = vst [vmem:[%s1158_s5 + $0x68] sm:$0xff] %v748_v44  ;;  %v752_v46 = vld [vmem:[%s1162_s28 + $0x78] sm:$0xff]  ;;  %s759_s28 = scalar_lea.vmem %s1328_s13, %s930_s25 [#allocation3]  }
 0x311   : >> { %751 = vst [vmem:[%s1158_s5 + $0x70] sm:$0xff] %v750_v45  ;;  %753 = vst [vmem:[%s1158_s5 + $0x78] sm:$0xff] %v752_v46  ;;  %s760_s5 = scalar_lea.vmem %s1369_s17, %s930_s25  }
 0x313 PF: > { %s1444_s26 = sand.u32 15, %s1477_s21   ;;  %s941_s30 = sshll.u32 %s1375_s19, 7 }
 0x314   : > { %s765_s7 = scalar_lea.vmem %s1328_s13, %s941_s30 [#allocation3]   ;;  %s767_s8 = scalar_lea.vmem %s1369_s17, %s941_s30  }
 0x315   : > { %p935_p0 = scmp.le.s32.totalorder %s1444_s26, 0 }
 0x316   : > { %s1172_s9 = smov (!%p935_p0), %s767_s8   ;;  %s1176_s10 = smov (!%p935_p0), %s765_s7  }
 0x317   : > { %870 = sbr.rel (%p935_p0) target bundleno = 808 (0x328), region = 188  ;;  %s1180_s11 = smov (!%p935_p0), 0  }
 0x318   : > { %s1184_s12 = smov (!%p935_p0), 0  }
 0x31e LB: >> { %v777_v47 = vld [vmem:[%s1178_s10] sm:$0xff]  ;;  %s779_s21 = sadd.s32 1, %s1182_s11  ;;  %s771_s12 = sadd.s32 1, %s1186_s12   ;;  %s1186_s12 = sphi %s1184_s12, %s771_s12   ;;  %s1182_s11 = sphi %s1180_s11, %s1181_s11   ;;  %s1178_s10 = sphi %s1176_s10, %s784_s10   ;;  %s1174_s9 = sphi %s1172_s9, %s785_s9  }
 0x31f   : >> { %778 = vst [vmem:[%s1174_s9] sm:$0xff] %v777_v47  ;;  %p780_p1 = scmp.ge.s32.totalorder %s779_s21, %s1444_s26  ;;  %p770_p2 = scmp.ge.s32.totalorder %s771_s12, %s1444_s26 }
 0x321   : >> { %s1481_s21 = smov (%p780_p1, %s779_s21), 0  ;;  %773 = sbr.rel (!%p770_p2) target bundleno = 798 (0x31e), region = 194 }
 0x322   : >> { %s936_s13 = sshll.u32 %s1481_s21, 3  ;;  %s1181_s11 = smov %s1481_s21  }
 0x323   : >> { %s784_s10 = scalar_lea.vmem %s765_s7, %s936_s13 [#allocation3]   ;;  %s785_s9 = scalar_lea.vmem %s767_s8, %s936_s13  }
 0x328 PF: > { %p13_p3 = scmp.ge.s32.totalorder %s1241_s24, 4   ;;  %s1473_s21 = smov %s1150_s22 }
 0x329   : > { %s1474_s22 = smov %s1249_s27  ;;  %s1475_s23 = smov %s1241_s24 }
 0x32a   :  { %15 = sbr.rel (!%p13_p3) target bundleno = 2 (0x2), region = 205 }

</bundles_post_ra>
